<compile_context>
chip_gen: v7x
topology: tpu7x:2x2x1
jax: 0.10.0
libtpu: 0.0.40
codegen_flags: <defaults>
</compile_context>

<pallas_src>
import jax
import jax.numpy as jnp
from jax.experimental import pallas as pl
from jax.experimental.pallas import tpu as pltpu


def _dft_matrix(n):
    """Real/imag parts of the (symmetric) n x n DFT matrix exp(-2*pi*i*a*b/n)."""
    k = jnp.arange(n, dtype=jnp.float32)
    ang = -2.0 * jnp.pi * jnp.outer(k, k) / n
    return jnp.cos(ang).astype(jnp.float32), jnp.sin(ang).astype(jnp.float32)


def _pick_block_batch(bc, cap=256):
    """Images per grid step: as large as possible within a VMEM-safe cap,
    keeping the second-to-last block dim either == BC or a multiple of 8."""
    if bc <= cap:
        return bc
    best = 0
    for tb in range(8, cap + 1, 8):
        if bc % tb == 0:
            best = tb
    if best:
        return best
    return bc  # TODO(synk): rare fallback (no 8-aligned divisor <= cap)


def _refdeconv_kernel(pk_ref, a_ref, dfwd_ref, dinv_ref, out_ref):
    HW = out_ref.shape[1]

    # Packed input: [ z | Re(FkCFy) | Im(FkCFy) | Re(F2k) | Im(F2k) ]
    z    = pk_ref[:, 0 * HW:1 * HW]
    fk_r = pk_ref[:, 1 * HW:2 * HW]
    fk_i = pk_ref[:, 2 * HW:3 * HW]
    f2_r = pk_ref[:, 3 * HW:4 * HW]
    f2_i = pk_ref[:, 4 * HW:5 * HW]
    alpha = a_ref[...]                      # (TB, 1), broadcasts along lanes

    # ---- forward 2-D DFT of the (real) z: one matmul gives [Re | Im] ----
    fz = jnp.dot(z, dfwd_ref[...], preferred_element_type=jnp.float32)  # (TB, 2HW)
    fzr = fz[:, :HW]
    fzi = fz[:, HW:]

    # ---- numerator = FkCFy + Fz * alpha ; denominator = csum(F2k, alpha) ----
    num_r = fk_r + fzr * alpha
    num_i = fk_i + fzi * alpha
    den_r = f2_r + alpha
    den_i = f2_i

    # ---- FX = cdiv(num, den) ; reciprocal on the EUP ----
    inv = pl.reciprocal(den_r * den_r + den_i * den_i, approx=True)
    fxr = (num_r * den_r + num_i * den_i) * inv
    fxi = (num_i * den_r - num_r * den_i) * inv

    # ---- real part of inverse 2-D DFT: one (TB,2HW) @ (2HW,HW) matmul ----
    fx_cat = jnp.concatenate([fxr, fxi], axis=-1)
    out_ref[...] = jnp.dot(fx_cat, dinv_ref[...],
                           preferred_element_type=jnp.float32).astype(out_ref.dtype)


def ref_deconv(z, FkCFy, F2k, alpha):
    """Pallas implementation of RefDeconv.forward.

    z:      (B, C, H, W)    float32
    FkCFy:  (B, C, H, W, 2) float32   (real/imag in last dim)
    F2k:    (B, C, H, W, 2) float32
    alpha:  (B, C, 1, 1)    float32
    returns (B, C, H, W)    float32
    """
    B, C, H, W = z.shape
    BC = B * C
    HW = H * W

    # Pack the five per-image real slabs into one lane-major stream.
    z_f  = z.reshape(BC, HW).astype(jnp.float32)
    fk_r = FkCFy[..., 0].reshape(BC, HW).astype(jnp.float32)
    fk_i = FkCFy[..., 1].reshape(BC, HW).astype(jnp.float32)
    f2_r = F2k[..., 0].reshape(BC, HW).astype(jnp.float32)
    f2_i = F2k[..., 1].reshape(BC, HW).astype(jnp.float32)
    packed = jnp.concatenate([z_f, fk_r, fk_i, f2_r, f2_i], axis=1)   # (BC, 5*HW)
    a_f = alpha.reshape(BC, 1).astype(jnp.float32)

    # Flattened 2-D DFT operator D = FH (x) FW on row-major-flattened images.
    fhr, fhi = _dft_matrix(H)
    fwr, fwi = _dft_matrix(W)
    dr = jnp.kron(fhr, fwr) - jnp.kron(fhi, fwi)          # Re(D)
    di = jnp.kron(fhr, fwi) + jnp.kron(fhi, fwr)          # Im(D)
    d_fwd = jnp.concatenate([dr, di], axis=1)             # (HW, 2HW): Z@D -> [Re|Im]
    d_inv = jnp.concatenate([dr, di], axis=0) / HW        # (2HW, HW): Re(ifft2)

    TB = _pick_block_batch(BC)
    grid = (BC // TB,)

    out = pl.pallas_call(
        _refdeconv_kernel,
        out_shape=jax.ShapeDtypeStruct((BC, HW), jnp.float32),
        grid=grid,
        in_specs=[
            pl.BlockSpec((TB, 5 * HW), lambda i: (i, 0)),   # packed slabs
            pl.BlockSpec((TB, 1), lambda i: (i, 0)),        # alpha column
            pl.BlockSpec((HW, 2 * HW), lambda i: (0, 0)),   # forward DFT op
            pl.BlockSpec((2 * HW, HW), lambda i: (0, 0)),   # inverse DFT op
        ],
        out_specs=pl.BlockSpec((TB, HW), lambda i: (i, 0)),
        compiler_params=pltpu.CompilerParams(
            dimension_semantics=("parallel",),
            vmem_limit_bytes=32 * 1024 * 1024,
        ),
    )(packed, a_f, d_fwd, d_inv)

    return out.reshape(B, C, H, W)


def _reference(z, FkCFy, F2k, alpha):
    """Plain-JAX reference matching the PyTorch module."""
    Fz = jnp.fft.fft2(z)
    fzr, fzi = jnp.real(Fz), jnp.imag(Fz)
    num_r = FkCFy[..., 0] + fzr * alpha
    num_i = FkCFy[..., 1] + fzi * alpha
    den_r = F2k[..., 0] + alpha
    den_i = F2k[..., 1]
    d2 = den_r * den_r + den_i * den_i
    fxr = (num_r * den_r + num_i * den_i) / d2
    fxi = (num_i * den_r - num_r * den_i) / d2
    return jnp.real(jnp.fft.ifft2(fxr + 1j * fxi))


if __name__ == "__main__":
    key = jax.random.PRNGKey(0)
    kz, kf, k2r, k2i, ka = jax.random.split(key, 5)

    B, C, H, W = 2, 4, 16, 16
    z = jax.random.normal(kz, (B, C, H, W), dtype=jnp.float32)
    FkCFy = jax.random.normal(kf, (B, C, H, W, 2), dtype=jnp.float32)
    # Keep the denominator well conditioned (F2k is |F(k)|^2-like in uabcnet).
    f2_real = jnp.abs(jax.random.normal(k2r, (B, C, H, W), dtype=jnp.float32)) + 0.5
    f2_imag = 0.1 * jax.random.normal(k2i, (B, C, H, W), dtype=jnp.float32)
    F2k = jnp.stack([f2_real, f2_imag], axis=-1)
    alpha = jnp.abs(jax.random.normal(ka, (B, C, 1, 1), dtype=jnp.float32)) * 0.5 + 0.1

    out = ref_deconv(z, FkCFy, F2k, alpha)
    out = jax.block_until_ready(out)

    ref = _reference(z, FkCFy, F2k, alpha)
    assert out.shape == (B, C, H, W)
    assert float(jnp.max(jnp.abs(out - ref))) < 5e-3, "mismatch vs FFT reference"

    print("KERNEL_OK")
</pallas_src>

<mosaic_0001>
module attributes {stable_mosaic.version = 11 : i64} {
  func.func @_refdeconv_kernel(%arg0: i32, %arg1: memref<8x1280xf32, #tpu.memory_space<vmem>>, %arg2: memref<8x1xf32, #tpu.memory_space<vmem>>, %arg3: memref<256x512xf32, #tpu.memory_space<vmem>>, %arg4: memref<512x256xf32, #tpu.memory_space<vmem>>, %arg5: memref<8x256xf32, #tpu.memory_space<vmem>>) attributes {dimension_semantics = [#tpu.dimension_semantics<parallel>], iteration_bounds = array<i64: 1>, scalar_prefetch = 0 : i64, scratch_operands = 0 : i64, tpu.core_type = #tpu.core_type<tc>, window_params = [{transform_indices = @transform_0, window_bounds = array<i64: 8, 1280>}, {transform_indices = @transform_1, window_bounds = array<i64: 8, 1>}, {pipeline_mode = #tpu.pipeline_mode<synchronous>, transform_indices = @transform_2, window_bounds = array<i64: 256, 512>}, {pipeline_mode = #tpu.pipeline_mode<synchronous>, transform_indices = @transform_3, window_bounds = array<i64: 512, 256>}, {transform_indices = @transform_4, window_bounds = array<i64: 8, 256>}]} {
    %c0 = arith.constant 0 : index
    %c0_0 = arith.constant 0 : index
    %0 = vector.load %arg1[%c0, %c0_0] : memref<8x1280xf32, #tpu.memory_space<vmem>>, vector<8x256xf32>
    %c0_1 = arith.constant 0 : index
    %c256 = arith.constant 256 : index
    %1 = vector.load %arg1[%c0_1, %c256] : memref<8x1280xf32, #tpu.memory_space<vmem>>, vector<8x256xf32>
    %c0_2 = arith.constant 0 : index
    %c512 = arith.constant 512 : index
    %2 = vector.load %arg1[%c0_2, %c512] : memref<8x1280xf32, #tpu.memory_space<vmem>>, vector<8x256xf32>
    %c0_3 = arith.constant 0 : index
    %c768 = arith.constant 768 : index
    %3 = vector.load %arg1[%c0_3, %c768] : memref<8x1280xf32, #tpu.memory_space<vmem>>, vector<8x256xf32>
    %c0_4 = arith.constant 0 : index
    %c1024 = arith.constant 1024 : index
    %4 = vector.load %arg1[%c0_4, %c1024] : memref<8x1280xf32, #tpu.memory_space<vmem>>, vector<8x256xf32>
    %c0_5 = arith.constant 0 : index
    %c0_6 = arith.constant 0 : index
    %5 = vector.load %arg2[%c0_5, %c0_6] : memref<8x1xf32, #tpu.memory_space<vmem>>, vector<8x1xf32>
    %c0_7 = arith.constant 0 : index
    %c0_8 = arith.constant 0 : index
    %6 = vector.load %arg3[%c0_7, %c0_8] : memref<256x512xf32, #tpu.memory_space<vmem>>, vector<256x512xf32>
    %cst = arith.constant dense<0.000000e+00> : vector<8x512xf32>
    %7 = tpu.matmul %0, %6, %cst {dimension_numbers = #tpu.dot_dimension_numbers<[1], [0], [0], [1], [0, 0, 1, 1], [], []>} : vector<8x256xf32>, vector<256x512xf32>, vector<8x512xf32> -> vector<8x512xf32>
    %8 = vector.extract_strided_slice %7 {offsets = [0, 0], sizes = [8, 256], strides = [1, 1]} : vector<8x512xf32> to vector<8x256xf32>
    %9 = vector.extract_strided_slice %7 {offsets = [0, 256], sizes = [8, 256], strides = [1, 1]} : vector<8x512xf32> to vector<8x256xf32>
    %10 = vector.broadcast %5 : vector<8x1xf32> to vector<8x256xf32>
    %11 = arith.mulf %8, %10 : vector<8x256xf32>
    %12 = arith.addf %1, %11 : vector<8x256xf32>
    %13 = vector.broadcast %5 : vector<8x1xf32> to vector<8x256xf32>
    %14 = arith.mulf %9, %13 : vector<8x256xf32>
    %15 = arith.addf %2, %14 : vector<8x256xf32>
    %16 = vector.broadcast %5 : vector<8x1xf32> to vector<8x256xf32>
    %17 = arith.addf %3, %16 : vector<8x256xf32>
    %18 = arith.mulf %17, %17 : vector<8x256xf32>
    %19 = arith.mulf %4, %4 : vector<8x256xf32>
    %20 = arith.addf %18, %19 : vector<8x256xf32>
    %21 = tpu.reciprocal %20 {approx = true} : vector<8x256xf32> -> vector<8x256xf32>
    %22 = arith.mulf %12, %17 : vector<8x256xf32>
    %23 = arith.mulf %15, %4 : vector<8x256xf32>
    %24 = arith.addf %22, %23 : vector<8x256xf32>
    %25 = arith.mulf %24, %21 : vector<8x256xf32>
    %26 = arith.mulf %15, %17 : vector<8x256xf32>
    %27 = arith.mulf %12, %4 : vector<8x256xf32>
    %28 = arith.subf %26, %27 : vector<8x256xf32>
    %29 = arith.mulf %28, %21 : vector<8x256xf32>
    %30 = tpu.concatenate %25, %29 in 1 : vector<8x256xf32>, vector<8x256xf32> -> vector<8x512xf32>
    %c0_9 = arith.constant 0 : index
    %c0_10 = arith.constant 0 : index
    %31 = vector.load %arg4[%c0_9, %c0_10] : memref<512x256xf32, #tpu.memory_space<vmem>>, vector<512x256xf32>
    %cst_11 = arith.constant dense<0.000000e+00> : vector<8x256xf32>
    %32 = tpu.matmul %30, %31, %cst_11 {dimension_numbers = #tpu.dot_dimension_numbers<[1], [0], [0], [1], [0, 0, 1, 1], [], []>} : vector<8x512xf32>, vector<512x256xf32>, vector<8x256xf32> -> vector<8x256xf32>
    %c0_12 = arith.constant 0 : index
    %c0_13 = arith.constant 0 : index
    %33 = vector.load %arg5[%c0_12, %c0_13] : memref<8x256xf32, #tpu.memory_space<vmem>>, vector<8x256xf32>
    tpu.vector_store %arg5[%c0_12, %c0_13], %32 {strides = array<i32>} : memref<8x256xf32, #tpu.memory_space<vmem>>, vector<8x256xf32>,
    return
  }
  func.func @transform_0(%arg0: i32) -> (i32, i32) {
    %c0_i32 = arith.constant 0 : i32
    %c0_i32_0 = arith.constant 0 : i32
    return %arg0, %c0_i32 : i32, i32
  }
  func.func @transform_1(%arg0: i32) -> (i32, i32) {
    %c0_i32 = arith.constant 0 : i32
    %c0_i32_0 = arith.constant 0 : i32
    return %arg0, %c0_i32 : i32, i32
  }
  func.func @transform_2(%arg0: i32) -> (i32, i32) {
    %c0_i32 = arith.constant 0 : i32
    %c0_i32_0 = arith.constant 0 : i32
    %c0_i32_1 = arith.constant 0 : i32
    return %c0_i32, %c0_i32_0 : i32, i32
  }
  func.func @transform_3(%arg0: i32) -> (i32, i32) {
    %c0_i32 = arith.constant 0 : i32
    %c0_i32_0 = arith.constant 0 : i32
    %c0_i32_1 = arith.constant 0 : i32
    return %c0_i32, %c0_i32_0 : i32, i32
  }
  func.func @transform_4(%arg0: i32) -> (i32, i32) {
    %c0_i32 = arith.constant 0 : i32
    %c0_i32_0 = arith.constant 0 : i32
    return %arg0, %c0_i32 : i32, i32
  }
}

</mosaic_0001>

<bundles_post_ra>
// kernel: tpu_custom_call.1
= control target key start
LH: loop header
LB: loop body
LE: loop exit
PB: predicated region body
PF: predicated region fallthrough
CT: control target
= control target key end

     0   :  { %9 = vsyncpa [#allocation3], 0  ;;  %s1127_s0 = inlined_call_operand.hbm [shape: f32[8,1280], index: 0, kind: input, shape index: {}]   ;;  %s1128_s1 = inlined_call_operand.vmem [shape: f32[8,1], index: 1, kind: input, shape index: {}]   ;;  %s1129_s2 = inlined_call_operand.hbm [shape: f32[256,512], index: 2, kind: input, shape index: {}]   ;;  %s1130_s3 = inlined_call_operand.hbm [shape: f32[512,256], index: 3, kind: input, shape index: {}]   ;;  %s1131_s4 = inlined_call_operand.hbm [shape: f32[8,256], index: 4, kind: output, shape index: {}]  }
   0x1   :  { %10 = vsyncpa [#allocation6], 0 }
   0x2   :  { %11 = vsyncpa [#allocation4], 0  ;;  %s1031_s15 = smov [#allocation5]   ;;  %s937_s19 = scalar_lea.hbm %s1129_s2, 16384 }
   0x3   :  { %s29_s16 = sshll.u32 %s1031_s15, 4  ;;  %p938_p0 = scmp.ne.s32.totalorder %s1129_s2, %s937_s19  ;;  %s30_s16 = int_to_ptr.vmem [resolvable:$true] %s29_s16 }
   0x4   :  { %p941_p1 = scmp.lt.u32.totalorder %s937_s19, %s1129_s2 }
   0x6   :  { %p943_p2 = pnand %p941_p1, %p938_p0 }
   0x8   :  { %946 = shalt.err (!%p943_p2)
}
   0x9   :  { %s947_s24 = scalar_lea.vmem %s30_s16, 16384  ;;  %p952_p4 = scmp.lt.s32.totalorder %s30_s16, %s30_s16 }
   0xa   :  { %p948_p3 = scmp.ne.s32.totalorder %s30_s16, %s947_s24  ;;  %p953_p5 = scmp.lt.s32.totalorder %s947_s24, %s947_s24 }
   0xc   :  { %p954_p6 = por %p953_p5, %p952_p4 }
   0xe   :  { %p955_p7 = pnand %p954_p6, %p948_p3 }
  0x10   :  { %958 = shalt.err (!%p955_p7)
}
  0x11   :  { %s1032_s25 = smov 512   ;;  %s1033_s26 = smov 32  }
  0x12   :  { %35 = dma.hbm_to_vmem [thread:$0]  %s1129_s2, 16384, %s30_s16, [#allocation6], %s1032_s25, %s1032_s25, %s1033_s26  }
  0x13   :  { %s1034_s29 = smov [#allocation2]   ;;  %s1035_s5 = smov [#allocation7]  }
  0x14   :  { %s18_s30 = sshll.u32 %s1034_s29, 4  ;;  %s41_s6 = sshll.u32 %s1035_s5, 4  ;;  %s19_s30 = int_to_ptr.vmem [resolvable:$true] %s18_s30  ;;  %s42_s6 = int_to_ptr.vmem [resolvable:$true] %s41_s6 }
  0x15   :  { %s959_s9 = scalar_lea.hbm %s1127_s0, 1280 }
  0x16   :  { %p960_p8 = scmp.ne.s32.totalorder %s1127_s0, %s959_s9  ;;  %p963_p9 = scmp.lt.u32.totalorder %s959_s9, %s1127_s0 }
  0x18   :  { %p965_p10 = pnand %p963_p9, %p960_p8 }
  0x1a   :  { %968 = shalt.err (!%p965_p10)
}
  0x1b   :  { %s969_s2 = scalar_lea.vmem %s19_s30, 1280  ;;  %p974_p12 = scmp.lt.s32.totalorder %s19_s30, %s19_s30 }
  0x1c   :  { %p970_p11 = scmp.ne.s32.totalorder %s19_s30, %s969_s2  ;;  %p975_p13 = scmp.lt.s32.totalorder %s969_s2, %s969_s2 }
  0x1e   :  { %p976_p0 = por %p975_p13, %p974_p12 }
  0x20   :  { %p977_p1 = pnand %p976_p0, %p970_p11 }
  0x22   :  { %980 = shalt.err (!%p977_p1)
}
  0x23   :  { %21 = dma.hbm_to_vmem [thread:$0]  %s1127_s0, 1280, %s19_s30, [#allocation3]  }
  0x24   :  { %s981_s18 = scalar_lea.hbm %s1130_s3, 16384 }
  0x25   :  { %p982_p2 = scmp.ne.s32.totalorder %s1130_s3, %s981_s18  ;;  %p985_p3 = scmp.lt.u32.totalorder %s981_s18, %s1130_s3 }
  0x27   :  { %p987_p4 = pnand %p985_p3, %p982_p2 }
  0x29   :  { %990 = shalt.err (!%p987_p4)
}
  0x2a   :  { %s991_s23 = scalar_lea.vmem %s42_s6, 16384  ;;  %p996_p6 = scmp.lt.s32.totalorder %s42_s6, %s42_s6 }
  0x2b   :  { %p992_p5 = scmp.ne.s32.totalorder %s42_s6, %s991_s23  ;;  %p997_p7 = scmp.lt.s32.totalorder %s991_s23, %s991_s23 }
  0x2d   :  { %p998_p8 = por %p997_p7, %p996_p6 }
  0x2f   :  { %p999_p9 = pnand %p998_p8, %p992_p5 }
  0x31   :  { %1002 = shalt.err (!%p999_p9)
}
  0x32   :  { %s1036_s0 = smov 256   ;;  %s1037_s24 = smov 16  }
  0x33   :  { %47 = dma.hbm_to_vmem [thread:$0]  %s1130_s3, 16384, %s42_s6, [#allocation6], %s1036_s0, %s1036_s0, %s1037_s24  }
  0x34   :  { %1025 = dma.done.wait [#allocation3], 1280  }
  0x35   :  { %1026 = vsyncadd [#allocation3], 4294966016 }
  0x36   :  { %1027 = dma.done.wait [#allocation6], 32768  }
  0x37   :  { %1028 = vsyncadd [#allocation6], 4294934528  ;;  %v69_v0 = vld [vmem:[#allocation5 + $0x8] sm:$0xff]  ;;  %v68_v2 = vld [vmem:[#allocation5] sm:$0xff]  ;;  %v1038_v14 = vmov 0  }
  0x38   :  { %v73_v1 = vld [vmem:[#allocation5 + $0x28] sm:$0xff]  ;;  %v72_v4 = vld [vmem:[#allocation5 + $0x20] sm:$0xff]  ;;  %932 = vset.pattern.permute.xlu0 %v1038_v14  ;;  %v1101_v42 = vld [vmem:[#allocation2 + $0x8] sm:$0xff] }
  0x39   :  { %v665_v3 = vpack.c.bf16 %v73_v1, %v69_v0  ;;  %v77_v5 = vld [vmem:[#allocation5 + $0x48] sm:$0xff]  ;;  %v667_v7 = vpack.c.bf16 %v72_v4, %v68_v2  ;;  %v76_v9 = vld [vmem:[#allocation5 + $0x40] sm:$0xff]  ;;  %260 = vmatprep.mubr.f32.mxu1 %v1101_v42 }
  0x3a   :  { %v81_v6 = vld [vmem:[#allocation5 + $0x68] sm:$0xff]  ;;  %v80_v10 = vld [vmem:[#allocation5 + $0x60] sm:$0xff] }
  0x3b   :  { %v669_v8 = vpack.c.bf16 %v81_v6, %v77_v5  ;;  %v85_v11 = vld [vmem:[#allocation5 + $0x88] sm:$0xff]  ;;  %666 = vmatprep.subr.bf16.mxu1 %v665_v3  ;;  %v671_v13 = vpack.c.bf16 %v80_v10, %v76_v9  ;;  %v84_v16 = vld [vmem:[#allocation5 + $0x80] sm:$0xff] }
  0x3c   :  { %v89_v12 = vld [vmem:[#allocation5 + $0xa8] sm:$0xff]  ;;  %668 = vmatpush1.bf16.msra.mxu1 %v667_v7  ;;  %v88_v17 = vld [vmem:[#allocation5 + $0xa0] sm:$0xff] }
  0x3d   :  { %670 = vmatprep.subr.bf16.mxu1 %v669_v8  ;;  %v673_v15 = vpack.c.bf16 %v89_v12, %v85_v11  ;;  %v93_v18 = vld [vmem:[#allocation5 + $0xc8] sm:$0xff]  ;;  %v675_v20 = vpack.c.bf16 %v88_v17, %v84_v16  ;;  %v92_v22 = vld [vmem:[#allocation5 + $0xc0] sm:$0xff]  ;;  %v67_v11 = vld [vmem:[%s1128_s1] sm:$0xff]  ;;  %s1039_s1 = smov [#allocation8]  }
  0x3e   :  { %v97_v19 = vld [vmem:[#allocation5 + $0xe8] sm:$0xff]  ;;  %v96_v23 = vld [vmem:[#allocation5 + $0xe0] sm:$0xff]  ;;  %340 = vperm.xlu0 %932, %v67_v11   ;;  %v118_v11 = vld [vmem:[#allocation5 + $0x190] sm:$0xff]  ;;  %s655_s28 = sshll.u32 %s1039_s1, 4  ;;  %s656_s28 = int_to_ptr.vmem [resolvable:$true] %s655_s28 }
  0x3f   :  { %v677_v21 = vpack.c.bf16 %v97_v19, %v93_v18  ;;  %v101_v24 = vld [vmem:[#allocation5 + $0x108] sm:$0xff]  ;;  %v679_v26 = vpack.c.bf16 %v96_v23, %v92_v22  ;;  %v100_v28 = vld [vmem:[#allocation5 + $0x100] sm:$0xff]  ;;  %s1003_s29 = scalar_lea.vmem %s656_s28, 256  ;;  %p1008_p11 = scmp.lt.s32.totalorder %s656_s28, %s656_s28 }
  0x40   :  { %672 = vmatpush1.bf16.msra.mxu1 %v671_v13  ;;  %v105_v25 = vld [vmem:[#allocation5 + $0x128] sm:$0xff]  ;;  %v104_v29 = vld [vmem:[#allocation5 + $0x120] sm:$0xff]  ;;  %p1004_p10 = scmp.ne.s32.totalorder %s656_s28, %s1003_s29  ;;  %p1009_p12 = scmp.lt.s32.totalorder %s1003_s29, %s1003_s29 }
  0x41   :  { %674 = vmatprep.subr.bf16.mxu1 %v673_v15  ;;  %v681_v27 = vpack.c.bf16 %v105_v25, %v101_v24  ;;  %v109_v30 = vld [vmem:[#allocation5 + $0x148] sm:$0xff]  ;;  %v683_v32 = vpack.c.bf16 %v104_v29, %v100_v28  ;;  %v108_v34 = vld [vmem:[#allocation5 + $0x140] sm:$0xff] }
  0x42   :  { %v113_v31 = vld [vmem:[#allocation5 + $0x168] sm:$0xff]  ;;  %v112_v35 = vld [vmem:[#allocation5 + $0x160] sm:$0xff]  ;;  %p1010_p13 = por %p1009_p12, %p1008_p11 }
  0x43   :  { %v685_v33 = vpack.c.bf16 %v113_v31, %v109_v30  ;;  %v117_v36 = vld [vmem:[#allocation5 + $0x188] sm:$0xff]  ;;  %v687_v38 = vpack.c.bf16 %v112_v35, %v108_v34  ;;  %v116_v40 = vld [vmem:[#allocation5 + $0x180] sm:$0xff]  ;;  %v71_v34 = vld [vmem:[#allocation5 + $0x18] sm:$0xff] }
  0x44   :  { %676 = vmatpush1.bf16.msra.mxu1 %v675_v20  ;;  %v121_v37 = vld [vmem:[#allocation5 + $0x1a8] sm:$0xff]  ;;  %v120_v41 = vld [vmem:[#allocation5 + $0x1a0] sm:$0xff]  ;;  %v75_v35 = vld [vmem:[#allocation5 + $0x38] sm:$0xff]  ;;  %p1011_p0 = pnand %p1010_p13, %p1004_p10 }
  0x45   :  { %678 = vmatprep.subr.bf16.mxu1 %v677_v21  ;;  %v689_v39 = vpack.c.bf16 %v121_v37, %v117_v36  ;;  %v125_v43 = vld [vmem:[#allocation5 + $0x1c8] sm:$0xff]  ;;  %v691_v45 = vpack.c.bf16 %v120_v41, %v116_v40  ;;  %v124_v47 = vld [vmem:[#allocation5 + $0x1c0] sm:$0xff]  ;;  %v729_v37 = vpack.c.bf16 %v75_v35, %v71_v34  ;;  %v79_v40 = vld [vmem:[#allocation5 + $0x58] sm:$0xff] }
  0x46   :  { %v129_v44 = vld [vmem:[#allocation5 + $0x1e8] sm:$0xff]  ;;  %v128_v48 = vld [vmem:[#allocation5 + $0x1e0] sm:$0xff]  ;;  %v83_v41 = vld [vmem:[#allocation5 + $0x78] sm:$0xff] }
  0x47   :  { %v693_v46 = vpack.c.bf16 %v129_v44, %v125_v43  ;;  %v133_v49 = vld [vmem:[#allocation5 + $0x208] sm:$0xff]  ;;  %v695_v51 = vpack.c.bf16 %v128_v48, %v124_v47  ;;  %v132_v53 = vld [vmem:[#allocation5 + $0x200] sm:$0xff]  ;;  %v1107_v43 = vld [vmem:[#allocation2] sm:$0xff] }
  0x48   :  { %680 = vmatpush1.bf16.msra.mxu1 %v679_v26  ;;  %v137_v50 = vld [vmem:[#allocation5 + $0x228] sm:$0xff]  ;;  %v136_v54 = vld [vmem:[#allocation5 + $0x220] sm:$0xff]  ;;  %v82_v47 = vld [vmem:[#allocation5 + $0x70] sm:$0xff] }
  0x49   :  { %682 = vmatprep.subr.bf16.mxu1 %v681_v27  ;;  %v697_v52 = vpack.c.bf16 %v137_v50, %v133_v49  ;;  %v141_v55 = vld [vmem:[#allocation5 + $0x248] sm:$0xff]  ;;  %v699_v57 = vpack.c.bf16 %v136_v54, %v132_v53  ;;  %v140_v59 = vld [vmem:[#allocation5 + $0x240] sm:$0xff]  ;;  %v87_v48 = vld [vmem:[#allocation5 + $0x98] sm:$0xff] }
  0x4a   :  { %v145_v56 = vld [vmem:[#allocation5 + $0x268] sm:$0xff]  ;;  %v144_v60 = vld [vmem:[#allocation5 + $0x260] sm:$0xff]  ;;  %v91_v49 = vld [vmem:[#allocation5 + $0xb8] sm:$0xff] }
  0x4b   :  { %v701_v58 = vpack.c.bf16 %v145_v56, %v141_v55  ;;  %v149_v61 = vld [vmem:[#allocation5 + $0x288] sm:$0xff]  ;;  %v703_v63 = vpack.c.bf16 %v144_v60, %v140_v59  ;;  %v148_v1 = vld [vmem:[#allocation5 + $0x280] sm:$0xff]  ;;  %v90_v53 = vld [vmem:[#allocation5 + $0xb0] sm:$0xff] }
  0x4c   :  { %684 = vmatpush1.bf16.msra.mxu1 %v683_v32  ;;  %v153_v62 = vld [vmem:[#allocation5 + $0x2a8] sm:$0xff]  ;;  %v152_v2 = vld [vmem:[#allocation5 + $0x2a0] sm:$0xff]  ;;  %v95_v54 = vld [vmem:[#allocation5 + $0xd8] sm:$0xff] }
  0x4d   :  { %686 = vmatprep.subr.bf16.mxu1 %v685_v33  ;;  %v705_v0 = vpack.c.bf16 %v153_v62, %v149_v61  ;;  %v157_v3 = vld [vmem:[#allocation5 + $0x2c8] sm:$0xff]  ;;  %v707_v5 = vpack.c.bf16 %v152_v2, %v148_v1  ;;  %v156_v7 = vld [vmem:[#allocation5 + $0x2c0] sm:$0xff]  ;;  %v99_v55 = vld [vmem:[#allocation5 + $0xf8] sm:$0xff] }
  0x4e   :  { %v161_v4 = vld [vmem:[#allocation5 + $0x2e8] sm:$0xff]  ;;  %v160_v8 = vld [vmem:[#allocation5 + $0x2e0] sm:$0xff]  ;;  %v98_v59 = vld [vmem:[#allocation5 + $0xf0] sm:$0xff] }
  0x4f   :  { %v709_v6 = vpack.c.bf16 %v161_v4, %v157_v3  ;;  %v165_v9 = vld [vmem:[#allocation5 + $0x308] sm:$0xff]  ;;  %v711_v12 = vpack.c.bf16 %v160_v8, %v156_v7  ;;  %v164_v14 = vld [vmem:[#allocation5 + $0x300] sm:$0xff]  ;;  %v103_v60 = vld [vmem:[#allocation5 + $0x118] sm:$0xff] }
  0x50   :  { %688 = vmatpush1.bf16.msra.mxu1 %v687_v38  ;;  %v169_v10 = vld [vmem:[#allocation5 + $0x328] sm:$0xff]  ;;  %v168_v15 = vld [vmem:[#allocation5 + $0x320] sm:$0xff]  ;;  %v70_v38 = vld [vmem:[#allocation5 + $0x10] sm:$0xff] }
  0x51   :  { %690 = vmatprep.subr.bf16.mxu1 %v689_v39  ;;  %v713_v13 = vpack.c.bf16 %v169_v10, %v165_v9  ;;  %v173_v16 = vld [vmem:[#allocation5 + $0x348] sm:$0xff]  ;;  %v715_v18 = vpack.c.bf16 %v168_v15, %v164_v14  ;;  %v172_v20 = vld [vmem:[#allocation5 + $0x340] sm:$0xff]  ;;  %v74_v39 = vld [vmem:[#allocation5 + $0x30] sm:$0xff] }
  0x52   :  { %v177_v17 = vld [vmem:[#allocation5 + $0x368] sm:$0xff]  ;;  %v176_v21 = vld [vmem:[#allocation5 + $0x360] sm:$0xff]  ;;  %v731_v44 = vpack.c.bf16 %v74_v39, %v70_v38  ;;  %v107_v61 = vld [vmem:[#allocation5 + $0x138] sm:$0xff] }
  0x53   :  { %v717_v19 = vpack.c.bf16 %v177_v17, %v173_v16  ;;  %v181_v22 = vld [vmem:[#allocation5 + $0x388] sm:$0xff]  ;;  %v719_v24 = vpack.c.bf16 %v176_v21, %v172_v20  ;;  %v180_v26 = vld [vmem:[#allocation5 + $0x380] sm:$0xff]  ;;  %v111_v1 = vld [vmem:[#allocation5 + $0x158] sm:$0xff] }
  0x54   :  { %692 = vmatpush1.bf16.msra.mxu1 %v691_v45  ;;  %v185_v23 = vld [vmem:[#allocation5 + $0x3a8] sm:$0xff]  ;;  %v184_v27 = vld [vmem:[#allocation5 + $0x3a0] sm:$0xff]  ;;  %v733_v45 = vpack.c.bf16 %v83_v41, %v79_v40  ;;  %v115_v2 = vld [vmem:[#allocation5 + $0x178] sm:$0xff] }
  0x55   :  { %694 = vmatprep.subr.bf16.mxu1 %v693_v46  ;;  %v721_v25 = vpack.c.bf16 %v185_v23, %v181_v22  ;;  %v189_v28 = vld [vmem:[#allocation5 + $0x3c8] sm:$0xff]  ;;  %v723_v30 = vpack.c.bf16 %v184_v27, %v180_v26  ;;  %v188_v32 = vld [vmem:[#allocation5 + $0x3c0] sm:$0xff]  ;;  %v78_v46 = vld [vmem:[#allocation5 + $0x50] sm:$0xff]  ;;  %v749_v4 = vpack.c.bf16 %v115_v2, %v111_v1 }
  0x56   :  { %v193_v29 = vld [vmem:[#allocation5 + $0x3e8] sm:$0xff]  ;;  %v192_v33 = vld [vmem:[#allocation5 + $0x3e0] sm:$0xff]  ;;  %v735_v50 = vpack.c.bf16 %v82_v47, %v78_v46  ;;  %v119_v7 = vld [vmem:[#allocation5 + $0x198] sm:$0xff] }
  0x57   :  { %v725_v31 = vpack.c.bf16 %v193_v29, %v189_v28  ;;  %v727_v36 = vpack.c.bf16 %v192_v33, %v188_v32  ;;  %v123_v8 = vld [vmem:[#allocation5 + $0x1b8] sm:$0xff]  ;;  %v126_v17 = vld [vmem:[#allocation5 + $0x1d0] sm:$0xff] }
  0x58   :  { %696 = vmatpush1.bf16.msra.mxu1 %v695_v51  ;;  %v737_v51 = vpack.c.bf16 %v91_v49, %v87_v48  ;;  %v753_v10 = vpack.c.bf16 %v123_v8, %v119_v7  ;;  %v131_v14 = vld [vmem:[#allocation5 + $0x1f8] sm:$0xff]  ;;  %v134_v23 = vld [vmem:[#allocation5 + $0x210] sm:$0xff]  ;;  %v377_v7 = vld [vmem:[#allocation7] sm:$0xff] }
  0x59   :  { %698 = vmatprep.subr.bf16.mxu1 %v697_v52  ;;  %v86_v52 = vld [vmem:[#allocation5 + $0x90] sm:$0xff]  ;;  %v139_v20 = vld [vmem:[#allocation5 + $0x238] sm:$0xff] }
  0x5a   :  { %v739_v56 = vpack.c.bf16 %v90_v53, %v86_v52  ;;  %v147_v26 = vld [vmem:[#allocation5 + $0x278] sm:$0xff]  ;;  %v142_v29 = vld [vmem:[#allocation5 + $0x250] sm:$0xff] }
  0x5b   :  { %v155_v32 = vld [vmem:[#allocation5 + $0x2b8] sm:$0xff]  ;;  %v150_v35 = vld [vmem:[#allocation5 + $0x290] sm:$0xff] }
  0x5c   :  { %700 = vmatpush1.bf16.msra.mxu1 %v699_v57  ;;  %v741_v57 = vpack.c.bf16 %v99_v55, %v95_v54  ;;  %v163_v38 = vld [vmem:[#allocation5 + $0x2f8] sm:$0xff]  ;;  %v158_v41 = vld [vmem:[#allocation5 + $0x2d0] sm:$0xff] }
  0x5d   :  { %702 = vmatprep.subr.bf16.mxu1 %v701_v58  ;;  %v94_v58 = vld [vmem:[#allocation5 + $0xd0] sm:$0xff]  ;;  %v171_v46 = vld [vmem:[#allocation5 + $0x338] sm:$0xff] }
  0x5e   :  { %v743_v62 = vpack.c.bf16 %v98_v59, %v94_v58  ;;  %v166_v49 = vld [vmem:[#allocation5 + $0x310] sm:$0xff]  ;;  %v179_v52 = vld [vmem:[#allocation5 + $0x378] sm:$0xff] }
  0x5f   :  { %v174_v55 = vld [vmem:[#allocation5 + $0x350] sm:$0xff]  ;;  %v187_v58 = vld [vmem:[#allocation5 + $0x3b8] sm:$0xff] }
  0x60   :  { %704 = vmatpush1.bf16.msra.mxu1 %v703_v63  ;;  %v745_v63 = vpack.c.bf16 %v107_v61, %v103_v60  ;;  %v182_v61 = vld [vmem:[#allocation5 + $0x390] sm:$0xff] }
  0x61   :  { %706 = vmatprep.subr.bf16.mxu1 %v705_v0  ;;  %v102_v0 = vld [vmem:[#allocation5 + $0x110] sm:$0xff] }
  0x62   :  { %v190_v2 = vld [vmem:[#allocation5 + $0x3d0] sm:$0xff] }
  0x64   :  { %708 = vmatpush1.bf16.msra.mxu1 %v707_v5  ;;  %v110_v5 = vld [vmem:[#allocation5 + $0x150] sm:$0xff] }
  0x65   :  { %710 = vmatprep.subr.bf16.mxu1 %v709_v6  ;;  %v114_v6 = vld [vmem:[#allocation5 + $0x170] sm:$0xff] }
  0x66   :  { %v751_v9 = vpack.c.bf16 %v114_v6, %v110_v5  ;;  %v378_v5 = vld [vmem:[#allocation7 + $0x8] sm:$0xff]  ;;  %v380_v6 = vld [vmem:[#allocation7 + $0x18] sm:$0xff] }
  0x67   :  { %v793_v8 = vpack.c.bf16 %v380_v6, %v378_v5  ;;  %v419_v5 = vld [vmem:[#allocation7 + $0x150] sm:$0xff]  ;;  %v422_v6 = vld [vmem:[#allocation7 + $0x168] sm:$0xff] }
  0x68   :  { %712 = vmatpush1.bf16.msra.mxu1 %v711_v12  ;;  %v122_v12 = vld [vmem:[#allocation5 + $0x1b0] sm:$0xff] }
  0x69   :  { %714 = vmatprep.subr.bf16.mxu1 %v713_v13  ;;  %v127_v13 = vld [vmem:[#allocation5 + $0x1d8] sm:$0xff]  ;;  %v755_v15 = vpack.c.bf16 %v122_v12, %v118_v11  ;;  %794 = vmatprep.subr.bf16.mxu0 %v793_v8 }
  0x6a   :  { %v757_v16 = vpack.c.bf16 %v131_v14, %v127_v13  ;;  %v384_v11 = vld [vmem:[#allocation7 + $0x38] sm:$0xff]  ;;  %v381_v14 = vld [vmem:[#allocation7 + $0x20] sm:$0xff] }
  0x6c   :  { %716 = vmatpush1.bf16.msra.mxu1 %v715_v18  ;;  %v130_v18 = vld [vmem:[#allocation5 + $0x1f0] sm:$0xff] }
  0x6d   :  { %718 = vmatprep.subr.bf16.mxu1 %v717_v19  ;;  %v135_v19 = vld [vmem:[#allocation5 + $0x218] sm:$0xff]  ;;  %v759_v21 = vpack.c.bf16 %v130_v18, %v126_v17 }
  0x6e   :  { %v761_v22 = vpack.c.bf16 %v139_v20, %v135_v19  ;;  %v388_v17 = vld [vmem:[#allocation7 + $0x58] sm:$0xff]  ;;  %v385_v20 = vld [vmem:[#allocation7 + $0x40] sm:$0xff] }
  0x70   :  { %720 = vmatpush1.bf16.msra.mxu1 %v719_v24  ;;  %v138_v24 = vld [vmem:[#allocation5 + $0x230] sm:$0xff] }
  0x71   :  { %722 = vmatprep.subr.bf16.mxu1 %v721_v25  ;;  %v143_v25 = vld [vmem:[#allocation5 + $0x258] sm:$0xff]  ;;  %v763_v27 = vpack.c.bf16 %v138_v24, %v134_v23 }
  0x72   :  { %v765_v28 = vpack.c.bf16 %v147_v26, %v143_v25  ;;  %v389_v25 = vld [vmem:[#allocation7 + $0x60] sm:$0xff]  ;;  %v391_v26 = vld [vmem:[#allocation7 + $0x70] sm:$0xff] }
  0x74   :  { %724 = vmatpush1.bf16.msra.mxu1 %v723_v30  ;;  %v146_v30 = vld [vmem:[#allocation5 + $0x270] sm:$0xff] }
  0x75   :  { %726 = vmatprep.subr.bf16.mxu1 %v725_v31  ;;  %v151_v31 = vld [vmem:[#allocation5 + $0x298] sm:$0xff]  ;;  %v767_v33 = vpack.c.bf16 %v146_v30, %v142_v29  ;;  %v807_v29 = vpack.c.bf16 %v391_v26, %v389_v25 }
  0x76   :  { %v769_v34 = vpack.c.bf16 %v155_v32, %v151_v31  ;;  %v393_v31 = vld [vmem:[#allocation7 + $0x80] sm:$0xff]  ;;  %v395_v32 = vld [vmem:[#allocation7 + $0x90] sm:$0xff]  ;;  %v436_v25 = vld [vmem:[#allocation7 + $0x1d8] sm:$0xff] }
  0x78   :  { %728 = vmatpush1.bf16.msra.mxu1 %v727_v36  ;;  %v154_v36 = vld [vmem:[#allocation5 + $0x2b0] sm:$0xff] }
  0x79   :  { %730 = vmatprep.subr.bf16.mxu1 %v729_v37  ;;  %v159_v37 = vld [vmem:[#allocation5 + $0x2d8] sm:$0xff]  ;;  %v771_v39 = vpack.c.bf16 %v154_v36, %v150_v35  ;;  %v811_v35 = vpack.c.bf16 %v395_v32, %v393_v31 }
  0x7a   :  { %v773_v40 = vpack.c.bf16 %v163_v38, %v159_v37  ;;  %v397_v37 = vld [vmem:[#allocation7 + $0xa0] sm:$0xff]  ;;  %v399_v38 = vld [vmem:[#allocation7 + $0xb0] sm:$0xff]  ;;  %v440_v31 = vld [vmem:[#allocation7 + $0x1f8] sm:$0xff] }
  0x7b   :  { %261 = vmatmul.mubr.f32.vlgmr.msra.gmra.mrb[0].mxu1 %v1107_v43 }
  0x7c   :  { %732 = vmatpush1.bf16.msra.mxu1 %v731_v44  ;;  %331 = vmatprep.mubr.f32.mxu1 %v1101_v42  ;;  %v106_v42 = vld [vmem:[#allocation5 + $0x130] sm:$0xff] }
  0x7d   :  { %734 = vmatprep.subr.bf16.mxu1 %v733_v45  ;;  %v747_v3 = vpack.c.bf16 %v106_v42, %v102_v0  ;;  %v162_v44 = vld [vmem:[#allocation5 + $0x2f0] sm:$0xff]  ;;  %v167_v45 = vld [vmem:[#allocation5 + $0x318] sm:$0xff] }
  0x7e   :  { %v775_v47 = vpack.c.bf16 %v162_v44, %v158_v41  ;;  %v777_v48 = vpack.c.bf16 %v171_v46, %v167_v45  ;;  %v195_v0 = vld [vmem:[#allocation5 + $0x3f8] sm:$0xff]  ;;  %v815_v41 = vpack.c.bf16 %v399_v38, %v397_v37  ;;  %v401_v45 = vld [vmem:[#allocation7 + $0xc0] sm:$0xff]  ;;  %v403_v46 = vld [vmem:[#allocation7 + $0xd0] sm:$0xff] }
  0x7f   :  { %v444_v37 = vld [vmem:[#allocation7 + $0x218] sm:$0xff] }
  0x80   :  { %736 = vmatpush1.bf16.msra.mxu1 %v735_v50  ;;  %v170_v50 = vld [vmem:[#allocation5 + $0x330] sm:$0xff] }
  0x81   :  { %738 = vmatprep.subr.bf16.mxu1 %v737_v51  ;;  %v175_v51 = vld [vmem:[#allocation5 + $0x358] sm:$0xff]  ;;  %v779_v53 = vpack.c.bf16 %v170_v50, %v166_v49  ;;  %v819_v49 = vpack.c.bf16 %v403_v46, %v401_v45 }
  0x82   :  { %v781_v54 = vpack.c.bf16 %v179_v52, %v175_v51  ;;  %v405_v51 = vld [vmem:[#allocation7 + $0xe0] sm:$0xff]  ;;  %v407_v52 = vld [vmem:[#allocation7 + $0xf0] sm:$0xff] }
  0x84   :  { %740 = vmatpush1.bf16.msra.mxu1 %v739_v56  ;;  %v178_v56 = vld [vmem:[#allocation5 + $0x370] sm:$0xff] }
  0x85   :  { %742 = vmatprep.subr.bf16.mxu1 %v741_v57  ;;  %v183_v57 = vld [vmem:[#allocation5 + $0x398] sm:$0xff]  ;;  %v783_v59 = vpack.c.bf16 %v178_v56, %v174_v55  ;;  %v823_v55 = vpack.c.bf16 %v407_v52, %v405_v51 }
  0x86   :  { %v785_v60 = vpack.c.bf16 %v187_v58, %v183_v57  ;;  %v409_v57 = vld [vmem:[#allocation7 + $0x100] sm:$0xff]  ;;  %v411_v58 = vld [vmem:[#allocation7 + $0x110] sm:$0xff] }
  0x88   :  { %744 = vmatpush1.bf16.msra.mxu1 %v743_v62  ;;  %v186_v62 = vld [vmem:[#allocation5 + $0x3b0] sm:$0xff] }
  0x89   :  { %746 = vmatprep.subr.bf16.mxu1 %v745_v63  ;;  %v191_v63 = vld [vmem:[#allocation5 + $0x3d8] sm:$0xff]  ;;  %v787_v42 = vpack.c.bf16 %v186_v62, %v182_v61  ;;  %v827_v61 = vpack.c.bf16 %v411_v58, %v409_v57  ;;  %v59_v58 = vld [vmem:[#allocation2 + $0x10] sm:$0xff] }
  0x8a   :  { %v789_v1 = vpack.c.bf16 %v195_v0, %v191_v63  ;;  %v413_v63 = vld [vmem:[#allocation7 + $0x120] sm:$0xff]  ;;  %v415_v0 = vld [vmem:[#allocation7 + $0x130] sm:$0xff] }
  0x8c   :  { %748 = vmatpush1.bf16.msra.mxu1 %v747_v3  ;;  %v194_v3 = vld [vmem:[#allocation5 + $0x3f0] sm:$0xff] }
  0x8d   :  { %750 = vmatprep.subr.bf16.mxu1 %v749_v4  ;;  %v791_v4 = vpack.c.bf16 %v194_v3, %v190_v2  ;;  %v831_v2 = vpack.c.bf16 %v415_v0, %v413_v63  ;;  %v62_v0 = vld [vmem:[#allocation2 + $0x28] sm:$0xff] }
  0x90   :  { %752 = vmatpush1.bf16.msra.mxu1 %v751_v9  ;;  %v379_v9 = vld [vmem:[#allocation7 + $0x10] sm:$0xff] }
  0x91   :  { %754 = vmatprep.subr.bf16.mxu1 %v753_v10  ;;  %v382_v10 = vld [vmem:[#allocation7 + $0x28] sm:$0xff]  ;;  %v795_v12 = vpack.c.bf16 %v379_v9, %v377_v7  ;;  %v424_v7 = vld [vmem:[#allocation7 + $0x178] sm:$0xff] }
  0x92   :  { %v797_v13 = vpack.c.bf16 %v384_v11, %v382_v10  ;;  %v837_v9 = vpack.c.bf16 %v424_v7, %v422_v6  ;;  %v421_v10 = vld [vmem:[#allocation7 + $0x160] sm:$0xff]  ;;  %v423_v11 = vld [vmem:[#allocation7 + $0x170] sm:$0xff] }
  0x93   :  { %796 = vmatpush1.bf16.msra.mxu0 %v795_v12  ;;  %v426_v12 = vld [vmem:[#allocation7 + $0x188] sm:$0xff] }
  0x94   :  { %756 = vmatpush1.bf16.msra.mxu1 %v755_v15  ;;  %v383_v15 = vld [vmem:[#allocation7 + $0x30] sm:$0xff]  ;;  %798 = vmatprep.subr.bf16.mxu0 %v797_v13  ;;  %v428_v13 = vld [vmem:[#allocation7 + $0x198] sm:$0xff] }
  0x95   :  { %758 = vmatprep.subr.bf16.mxu1 %v757_v16  ;;  %v386_v16 = vld [vmem:[#allocation7 + $0x48] sm:$0xff]  ;;  %v799_v18 = vpack.c.bf16 %v383_v15, %v381_v14  ;;  %v839_v14 = vpack.c.bf16 %v423_v11, %v421_v10  ;;  %v841_v15 = vpack.c.bf16 %v428_v13, %v426_v12 }
  0x96   :  { %v801_v19 = vpack.c.bf16 %v388_v17, %v386_v16  ;;  %v425_v16 = vld [vmem:[#allocation7 + $0x180] sm:$0xff]  ;;  %v427_v17 = vld [vmem:[#allocation7 + $0x190] sm:$0xff] }
  0x97   :  { %800 = vmatpush1.bf16.msra.mxu0 %v799_v18  ;;  %v843_v18 = vpack.c.bf16 %v427_v17, %v425_v16  ;;  %v441_v17 = vld [vmem:[#allocation7 + $0x200] sm:$0xff] }
  0x98   :  { %760 = vmatpush1.bf16.msra.mxu1 %v759_v21  ;;  %v390_v21 = vld [vmem:[#allocation7 + $0x68] sm:$0xff]  ;;  %802 = vmatprep.subr.bf16.mxu0 %v801_v19 }
  0x99   :  { %762 = vmatprep.subr.bf16.mxu1 %v761_v22  ;;  %v392_v22 = vld [vmem:[#allocation7 + $0x78] sm:$0xff]  ;;  %v430_v19 = vld [vmem:[#allocation7 + $0x1a8] sm:$0xff] }
  0x9a   :  { %v805_v24 = vpack.c.bf16 %v392_v22, %v390_v21  ;;  %v429_v21 = vld [vmem:[#allocation7 + $0x1a0] sm:$0xff]  ;;  %v431_v22 = vld [vmem:[#allocation7 + $0x1b0] sm:$0xff] }
  0x9c   :  { %764 = vmatpush1.bf16.msra.mxu1 %v763_v27  ;;  %v394_v27 = vld [vmem:[#allocation7 + $0x88] sm:$0xff] }
  0x9d   :  { %766 = vmatprep.subr.bf16.mxu1 %v765_v28  ;;  %v396_v28 = vld [vmem:[#allocation7 + $0x98] sm:$0xff] }
  0x9e   :  { %v809_v30 = vpack.c.bf16 %v396_v28, %v394_v27  ;;  %v433_v27 = vld [vmem:[#allocation7 + $0x1c0] sm:$0xff]  ;;  %v435_v28 = vld [vmem:[#allocation7 + $0x1d0] sm:$0xff] }
  0xa0   :  { %768 = vmatpush1.bf16.msra.mxu1 %v767_v33  ;;  %v398_v33 = vld [vmem:[#allocation7 + $0xa8] sm:$0xff] }
  0xa1   :  { %770 = vmatprep.subr.bf16.mxu1 %v769_v34  ;;  %v400_v34 = vld [vmem:[#allocation7 + $0xb8] sm:$0xff] }
  0xa2   :  { %v813_v36 = vpack.c.bf16 %v400_v34, %v398_v33  ;;  %v437_v33 = vld [vmem:[#allocation7 + $0x1e0] sm:$0xff]  ;;  %v439_v34 = vld [vmem:[#allocation7 + $0x1f0] sm:$0xff] }
  0xa4   :  { %772 = vmatpush1.bf16.msra.mxu1 %v771_v39  ;;  %v402_v39 = vld [vmem:[#allocation7 + $0xc8] sm:$0xff] }
  0xa5   :  { %774 = vmatprep.subr.bf16.mxu1 %v773_v40  ;;  %v404_v40 = vld [vmem:[#allocation7 + $0xd8] sm:$0xff] }
  0xa6   :  { %v817_v44 = vpack.c.bf16 %v404_v40, %v402_v39 }
  0xa8   :  { %776 = vmatpush1.bf16.msra.mxu1 %v775_v47  ;;  %v406_v47 = vld [vmem:[#allocation7 + $0xe8] sm:$0xff] }
  0xa9   :  { %778 = vmatprep.subr.bf16.mxu1 %v777_v48  ;;  %v408_v48 = vld [vmem:[#allocation7 + $0xf8] sm:$0xff] }
  0xaa   :  { %v821_v50 = vpack.c.bf16 %v408_v48, %v406_v47  ;;  %v65_v48 = vld [vmem:[#allocation2 + $0x40] sm:$0xff] }
  0xab   :  { %v355_v51 = vmul.f32 %v65_v48, %v65_v48 }
  0xac   :  { %780 = vmatpush1.bf16.msra.mxu1 %v779_v53  ;;  %v410_v53 = vld [vmem:[#allocation7 + $0x108] sm:$0xff] }
  0xad   :  { %782 = vmatprep.subr.bf16.mxu1 %v781_v54  ;;  %v412_v54 = vld [vmem:[#allocation7 + $0x118] sm:$0xff] }
  0xae   :  { %v825_v56 = vpack.c.bf16 %v412_v54, %v410_v53 }
  0xb0   :  { %784 = vmatpush1.bf16.msra.mxu1 %v783_v59  ;;  %v414_v59 = vld [vmem:[#allocation7 + $0x128] sm:$0xff] }
  0xb1   :  { %786 = vmatprep.subr.bf16.mxu1 %v785_v60  ;;  %v416_v60 = vld [vmem:[#allocation7 + $0x138] sm:$0xff] }
  0xb2   :  { %v829_v62 = vpack.c.bf16 %v416_v60, %v414_v59  ;;  %v60_v59 = vld [vmem:[#allocation2 + $0x18] sm:$0xff]  ;;  %v61_v60 = vld [vmem:[#allocation2 + $0x20] sm:$0xff] }
  0xb4   :  { %788 = vmatpush1.bf16.msra.mxu1 %v787_v42  ;;  %v418_v42 = vld [vmem:[#allocation7 + $0x148] sm:$0xff] }
  0xb5   :  { %790 = vmatprep.subr.bf16.mxu1 %v789_v1  ;;  %v420_v1 = vld [vmem:[#allocation7 + $0x158] sm:$0xff] }
  0xb6   :  { %v833_v3 = vpack.c.bf16 %v420_v1, %v418_v42 }
  0xb8   :  { %792 = vmatpush1.bf16.msra.mxu1 %v791_v4  ;;  %v417_v4 = vld [vmem:[#allocation7 + $0x140] sm:$0xff] }
  0xb9   :  { %v835_v8 = vpack.c.bf16 %v419_v5, %v417_v4 }
  0xbb   :  { %332 = vmatmul.mubr.f32.vlgmr.msra.gmra.mrb[2].mxu1 %v1107_v43  ;;  %v387_v43 = vld [vmem:[#allocation7 + $0x50] sm:$0xff] }
  0xbc   :  { %v803_v23 = vpack.c.bf16 %v387_v43, %v385_v20  ;;  %v432_v20 = vld [vmem:[#allocation7 + $0x1b8] sm:$0xff] }
  0xbd   :  { %v845_v43 = vpack.c.bf16 %v432_v20, %v430_v19  ;;  %v341_v45 = vpop.permute.xlu0 %340 }
  0xbe   :  { %804 = vmatpush1.bf16.msra.mxu0 %v803_v23  ;;  %v847_v23 = vpack.c.bf16 %v431_v22, %v429_v21  ;;  %v448_v21 = vld [vmem:[#allocation7 + $0x238] sm:$0xff] }
  0xbf   :  { %806 = vmatprep.subr.bf16.mxu0 %v805_v24  ;;  %v434_v24 = vld [vmem:[#allocation7 + $0x1c8] sm:$0xff] }
  0xc0   :  { %v849_v26 = vpack.c.bf16 %v436_v25, %v434_v24 }
  0xc2   :  { %808 = vmatpush1.bf16.msra.mxu0 %v807_v29  ;;  %v851_v29 = vpack.c.bf16 %v435_v28, %v433_v27  ;;  %v445_v27 = vld [vmem:[#allocation7 + $0x220] sm:$0xff]  ;;  %v447_v28 = vld [vmem:[#allocation7 + $0x230] sm:$0xff] }
  0xc3   :  { %810 = vmatprep.subr.bf16.mxu0 %v809_v30  ;;  %v438_v30 = vld [vmem:[#allocation7 + $0x1e8] sm:$0xff] }
  0xc4   :  { %v853_v32 = vpack.c.bf16 %v440_v31, %v438_v30  ;;  %v450_v30 = vld [vmem:[#allocation7 + $0x248] sm:$0xff]  ;;  %v452_v31 = vld [vmem:[#allocation7 + $0x258] sm:$0xff] }
  0xc6   :  { %812 = vmatpush1.bf16.msra.mxu0 %v811_v35  ;;  %v855_v35 = vpack.c.bf16 %v439_v34, %v437_v33  ;;  %v865_v33 = vpack.c.bf16 %v452_v31, %v450_v30  ;;  %v449_v34 = vld [vmem:[#allocation7 + $0x240] sm:$0xff] }
  0xc7   :  { %814 = vmatprep.subr.bf16.mxu0 %v813_v36  ;;  %v442_v36 = vld [vmem:[#allocation7 + $0x208] sm:$0xff]  ;;  %v489_v31 = vld [vmem:[#allocation7 + $0x380] sm:$0xff] }
  0xc8   :  { %v857_v38 = vpack.c.bf16 %v444_v37, %v442_v36  ;;  %v454_v36 = vld [vmem:[#allocation7 + $0x268] sm:$0xff]  ;;  %v456_v37 = vld [vmem:[#allocation7 + $0x278] sm:$0xff] }
  0xca   :  { %816 = vmatpush1.bf16.msra.mxu0 %v815_v41  ;;  %v63_v41 = vld [vmem:[#allocation2 + $0x30] sm:$0xff] }
  0xcb   :  { %818 = vmatprep.subr.bf16.mxu0 %v817_v44  ;;  %v64_v44 = vld [vmem:[#allocation2 + $0x38] sm:$0xff]  ;;  %v351_v46 = vadd.f32 %v341_v45, %v63_v41  ;;  %v455_v41 = vld [vmem:[#allocation7 + $0x270] sm:$0xff] }
  0xcc   :  { %v352_v47 = vadd.f32 %v341_v45, %v64_v44  ;;  %v458_v44 = vld [vmem:[#allocation7 + $0x288] sm:$0xff] }
  0xce   :  { %820 = vmatpush1.bf16.msra.mxu0 %v819_v49  ;;  %v66_v49 = vld [vmem:[#allocation2 + $0x48] sm:$0xff]  ;;  %v354_v52 = vmul.f32 %v352_v47, %v352_v47 }
  0xcf   :  { %822 = vmatprep.subr.bf16.mxu0 %v821_v50  ;;  %v353_v50 = vmul.f32 %v351_v46, %v351_v46  ;;  %v356_v53 = vmul.f32 %v66_v49, %v66_v49 }
  0xd1   :  { %v357_v54 = vadd.f32 %v355_v51, %v353_v50  ;;  %v462_v50 = vld [vmem:[#allocation7 + $0x2a8] sm:$0xff]  ;;  %v464_v51 = vld [vmem:[#allocation7 + $0x2b8] sm:$0xff] }
  0xd2   :  { %824 = vmatpush1.bf16.msra.mxu0 %v823_v55  ;;  %v358_v55 = vadd.f32 %v356_v53, %v354_v52  ;;  %v877_v53 = vpack.c.bf16 %v464_v51, %v462_v50  ;;  %v501_v51 = vld [vmem:[#allocation7 + $0x3e0] sm:$0xff] }
  0xd3   :  { %826 = vmatprep.subr.bf16.mxu0 %v825_v56  ;;  %933 = vrcp.f32 %v357_v54  ;;  %v461_v54 = vld [vmem:[#allocation7 + $0x2a0] sm:$0xff] }
  0xd4   :  { %935 = vrcp.f32 %v358_v55  ;;  %v463_v55 = vld [vmem:[#allocation7 + $0x2b0] sm:$0xff] }
  0xd6   :  { %828 = vmatpush1.bf16.msra.mxu0 %v827_v61 }
  0xd7   :  { %830 = vmatprep.subr.bf16.mxu0 %v829_v62 }
  0xda   :  { %832 = vmatpush1.bf16.msra.mxu0 %v831_v2 }
  0xdb   :  { %834 = vmatprep.subr.bf16.mxu0 %v833_v3 }
  0xde   :  { %836 = vmatpush1.bf16.msra.mxu0 %v835_v8 }
  0xdf   :  { %838 = vmatprep.subr.bf16.mxu0 %v837_v9  ;;  %v934_v9 = vpop.eup %933 }
  0xe2   :  { %840 = vmatpush1.bf16.msra.mxu0 %v839_v14  ;;  %v936_v14 = vpop.eup %935 }
  0xe3   :  { %842 = vmatprep.subr.bf16.mxu0 %v841_v15 }
  0xe6   :  { %844 = vmatpush1.bf16.msra.mxu0 %v843_v18  ;;  %v443_v18 = vld [vmem:[#allocation7 + $0x210] sm:$0xff] }
  0xe7   :  { %846 = vmatprep.subr.bf16.mxu0 %v845_v43  ;;  %v446_v43 = vld [vmem:[#allocation7 + $0x228] sm:$0xff]  ;;  %v859_v24 = vpack.c.bf16 %v443_v18, %v441_v17 }
  0xea   :  { %848 = vmatpush1.bf16.msra.mxu0 %v847_v23 }
  0xeb   :  { %850 = vmatprep.subr.bf16.mxu0 %v849_v26  ;;  %v861_v26 = vpack.c.bf16 %v448_v21, %v446_v43  ;;  %v486_v43 = vld [vmem:[#allocation7 + $0x368] sm:$0xff]  ;;  %v488_v21 = vld [vmem:[#allocation7 + $0x378] sm:$0xff] }
  0xee   :  { %852 = vmatpush1.bf16.msra.mxu0 %v851_v29 }
  0xef   :  { %854 = vmatprep.subr.bf16.mxu0 %v853_v32  ;;  %v863_v32 = vpack.c.bf16 %v447_v28, %v445_v27  ;;  %v490_v27 = vld [vmem:[#allocation7 + $0x388] sm:$0xff]  ;;  %v492_v28 = vld [vmem:[#allocation7 + $0x398] sm:$0xff] }
  0xf0   :  { %v905_v30 = vpack.c.bf16 %v492_v28, %v490_v27 }
  0xf2   :  { %856 = vmatpush1.bf16.msra.mxu0 %v855_v35  ;;  %v451_v35 = vld [vmem:[#allocation7 + $0x250] sm:$0xff] }
  0xf3   :  { %858 = vmatprep.subr.bf16.mxu0 %v857_v38  ;;  %v867_v38 = vpack.c.bf16 %v451_v35, %v449_v34  ;;  %v496_v34 = vld [vmem:[#allocation7 + $0x3b8] sm:$0xff] }
 0x14e   :  { %v262_v39 = vpop.f32.mrb[0].mxu1 }
 0x14f   :  { %v264_v40 = vpop.f32.mrb[1].mxu1  ;;  %v343_v56 = vmul.f32 %v341_v45, %v262_v39  ;;  %v869_v39 = vpack.c.bf16 %v456_v37, %v454_v36  ;;  %v493_v37 = vld [vmem:[#allocation7 + $0x3a0] sm:$0xff] }
 0x150   :  { %v344_v57 = vmul.f32 %v341_v45, %v264_v40  ;;  %v453_v40 = vld [vmem:[#allocation7 + $0x260] sm:$0xff] }
 0x151   :  { %v345_v62 = vadd.f32 %v343_v56, %v59_v58  ;;  %v466_v56 = vld [vmem:[#allocation7 + $0x2c8] sm:$0xff]  ;;  %v879_v58 = vpack.c.bf16 %v463_v55, %v461_v54 }
 0x152   :  { %v346_v1 = vadd.f32 %v344_v57, %v60_v59  ;;  %v468_v57 = vld [vmem:[#allocation7 + $0x2d8] sm:$0xff] }
 0x153   :  { %v371_v7 = vmul.f32 %v345_v62, %v65_v48  ;;  %v361_v8 = vmul.f32 %v351_v46, %v345_v62  ;;  %v881_v59 = vpack.c.bf16 %v468_v57, %v466_v56  ;;  %v470_v62 = vld [vmem:[#allocation7 + $0x2e8] sm:$0xff] }
 0x154   :  { %v372_v10 = vmul.f32 %v346_v1, %v66_v49  ;;  %v362_v12 = vmul.f32 %v352_v47, %v346_v1  ;;  %v469_v1 = vld [vmem:[#allocation7 + $0x2e0] sm:$0xff] }
 0x18e   :  { %v333_v61 = vpop.f32.mrb[2].mxu1 }
 0x18f   :  { %v347_v63 = vmul.f32 %v341_v45, %v333_v61  ;;  %v335_v42 = vpop.f32.mrb[3].mxu1  ;;  %v467_v61 = vld [vmem:[#allocation7 + $0x2d0] sm:$0xff] }
 0x190   :  { %v348_v2 = vmul.f32 %v341_v45, %v335_v42  ;;  %v460_v45 = vld [vmem:[#allocation7 + $0x298] sm:$0xff] }
 0x191   :  { %v349_v3 = vadd.f32 %v347_v63, %v61_v60  ;;  %v465_v60 = vld [vmem:[#allocation7 + $0x2c0] sm:$0xff]  ;;  %v472_v63 = vld [vmem:[#allocation7 + $0x2f8] sm:$0xff] }
 0x192   :  { %v350_v4 = vadd.f32 %v348_v2, %v62_v0  ;;  %v883_v0 = vpack.c.bf16 %v467_v61, %v465_v60  ;;  %v885_v42 = vpack.c.bf16 %v472_v63, %v470_v62  ;;  %v471_v2 = vld [vmem:[#allocation7 + $0x2f0] sm:$0xff] }
 0x193   :  { %v363_v5 = vmul.f32 %v349_v3, %v65_v48  ;;  %v369_v6 = vmul.f32 %v351_v46, %v349_v3  ;;  %v871_v46 = vpack.c.bf16 %v455_v41, %v453_v40  ;;  %v457_v48 = vld [vmem:[#allocation7 + $0x280] sm:$0xff]  ;;  %v474_v3 = vld [vmem:[#allocation7 + $0x308] sm:$0xff]  ;;  %v500_v40 = vld [vmem:[#allocation7 + $0x3d8] sm:$0xff] }
 0x194   :  { %v370_v11 = vmul.f32 %v352_v47, %v350_v4  ;;  %v364_v13 = vmul.f32 %v350_v4, %v66_v49  ;;  %v873_v47 = vpack.c.bf16 %v460_v45, %v458_v44  ;;  %v459_v49 = vld [vmem:[#allocation7 + $0x290] sm:$0xff]  ;;  %v476_v4 = vld [vmem:[#allocation7 + $0x318] sm:$0xff]  ;;  %v497_v45 = vld [vmem:[#allocation7 + $0x3c0] sm:$0xff] }
 0x195   :  { %v373_v15 = vsub.f32 %v369_v6, %v371_v7  ;;  %v365_v16 = vadd.f32 %v363_v5, %v361_v8  ;;  %v875_v52 = vpack.c.bf16 %v459_v49, %v457_v48  ;;  %v887_v5 = vpack.c.bf16 %v471_v2, %v469_v1  ;;  %v473_v7 = vld [vmem:[#allocation7 + $0x300] sm:$0xff]  ;;  %v475_v8 = vld [vmem:[#allocation7 + $0x310] sm:$0xff]  ;;  %v504_v48 = vld [vmem:[#allocation7 + $0x3f8] sm:$0xff] }
 0x196   :  { %v366_v19 = vadd.f32 %v364_v13, %v362_v12  ;;  %v374_v20 = vsub.f32 %v370_v11, %v372_v10  ;;  %v889_v6 = vpack.c.bf16 %v476_v4, %v474_v3  ;;  %v480_v10 = vld [vmem:[#allocation7 + $0x338] sm:$0xff]  ;;  %v891_v11 = vpack.c.bf16 %v475_v8, %v473_v7  ;;  %v477_v13 = vld [vmem:[#allocation7 + $0x320] sm:$0xff] }
 0x197   :  { %v1112_v22 = vmul.f32 %v934_v9, %v373_v15  ;;  %v367_v25 = vmul.f32 %v934_v9, %v365_v16  ;;  %v478_v9 = vld [vmem:[#allocation7 + $0x328] sm:$0xff]  ;;  %v484_v16 = vld [vmem:[#allocation7 + $0x358] sm:$0xff] }
 0x198   :  { %v368_v23 = vmul.f32 %v936_v14, %v366_v19  ;;  %v376_v29 = vmul.f32 %v936_v14, %v374_v20  ;;  %v893_v12 = vpack.c.bf16 %v480_v10, %v478_v9  ;;  %v479_v14 = vld [vmem:[#allocation7 + $0x330] sm:$0xff]  ;;  %v482_v15 = vld [vmem:[#allocation7 + $0x348] sm:$0xff]  ;;  %v481_v19 = vld [vmem:[#allocation7 + $0x340] sm:$0xff] }
 0x199   :  { %v895_v17 = vpack.c.bf16 %v479_v14, %v477_v13  ;;  %v897_v18 = vpack.c.bf16 %v484_v16, %v482_v15  ;;  %v483_v20 = vld [vmem:[#allocation7 + $0x350] sm:$0xff] }
 0x19a   :  { %569 = vmatprep.mubr.f32.mxu0 %v368_v23  ;;  %v899_v23 = vpack.c.bf16 %v483_v20, %v481_v19 }
 0x19b   :  { %570 = vmatmul.mubr.f32.vlgmr.msra.gmra.mrb[0].mxu0 %v367_v25  ;;  %v485_v25 = vld [vmem:[#allocation7 + $0x360] sm:$0xff] }
 0x19c   :  { %860 = vmatpush1.bf16.msra.mxu0 %v859_v24  ;;  %640 = vmatprep.mubr.f32.mxu0 %v376_v29  ;;  %v901_v24 = vpack.c.bf16 %v488_v21, %v486_v43 }
 0x19d   :  { %862 = vmatprep.subr.bf16.mxu0 %v861_v26  ;;  %v487_v26 = vld [vmem:[#allocation7 + $0x370] sm:$0xff] }
 0x19e   :  { %v903_v29 = vpack.c.bf16 %v487_v26, %v485_v25 }
 0x1a0   :  { %864 = vmatpush1.bf16.msra.mxu0 %v863_v32  ;;  %v491_v32 = vld [vmem:[#allocation7 + $0x390] sm:$0xff] }
 0x1a1   :  { %866 = vmatprep.subr.bf16.mxu0 %v865_v33  ;;  %v494_v33 = vld [vmem:[#allocation7 + $0x3a8] sm:$0xff]  ;;  %v907_v35 = vpack.c.bf16 %v491_v32, %v489_v31 }
 0x1a2   :  { %v909_v36 = vpack.c.bf16 %v496_v34, %v494_v33 }
 0x1a4   :  { %868 = vmatpush1.bf16.msra.mxu0 %v867_v38  ;;  %v495_v38 = vld [vmem:[#allocation7 + $0x3b0] sm:$0xff] }
 0x1a5   :  { %870 = vmatprep.subr.bf16.mxu0 %v869_v39  ;;  %v498_v39 = vld [vmem:[#allocation7 + $0x3c8] sm:$0xff]  ;;  %v911_v41 = vpack.c.bf16 %v495_v38, %v493_v37 }
 0x1a6   :  { %v913_v44 = vpack.c.bf16 %v500_v40, %v498_v39 }
 0x1a8   :  { %872 = vmatpush1.bf16.msra.mxu0 %v871_v46  ;;  %v499_v46 = vld [vmem:[#allocation7 + $0x3d0] sm:$0xff] }
 0x1a9   :  { %874 = vmatprep.subr.bf16.mxu0 %v873_v47  ;;  %v502_v47 = vld [vmem:[#allocation7 + $0x3e8] sm:$0xff]  ;;  %v915_v49 = vpack.c.bf16 %v499_v46, %v497_v45 }
 0x1aa   :  { %v917_v50 = vpack.c.bf16 %v504_v48, %v502_v47 }
 0x1ac   :  { %876 = vmatpush1.bf16.msra.mxu0 %v875_v52  ;;  %v503_v52 = vld [vmem:[#allocation7 + $0x3f0] sm:$0xff] }
 0x1ad   :  { %878 = vmatprep.subr.bf16.mxu0 %v877_v53  ;;  %v919_v53 = vpack.c.bf16 %v503_v52, %v501_v51 }
 0x1b0   :  { %880 = vmatpush1.bf16.msra.mxu0 %v879_v58 }
 0x1b1   :  { %882 = vmatprep.subr.bf16.mxu0 %v881_v59 }
 0x1b4   :  { %884 = vmatpush1.bf16.msra.mxu0 %v883_v0 }
 0x1b5   :  { %886 = vmatprep.subr.bf16.mxu0 %v885_v42 }
 0x1b8   :  { %888 = vmatpush1.bf16.msra.mxu0 %v887_v5 }
 0x1b9   :  { %890 = vmatprep.subr.bf16.mxu0 %v889_v6 }
 0x1bc   :  { %892 = vmatpush1.bf16.msra.mxu0 %v891_v11 }
 0x1bd   :  { %894 = vmatprep.subr.bf16.mxu0 %v893_v12 }
 0x1c0   :  { %896 = vmatpush1.bf16.msra.mxu0 %v895_v17 }
 0x1c1   :  { %898 = vmatprep.subr.bf16.mxu0 %v897_v18 }
 0x1c4   :  { %900 = vmatpush1.bf16.msra.mxu0 %v899_v23 }
 0x1c5   :  { %902 = vmatprep.subr.bf16.mxu0 %v901_v24 }
 0x1c8   :  { %904 = vmatpush1.bf16.msra.mxu0 %v903_v29 }
 0x1c9   :  { %906 = vmatprep.subr.bf16.mxu0 %v905_v30 }
 0x1cc   :  { %908 = vmatpush1.bf16.msra.mxu0 %v907_v35 }
 0x1cd   :  { %910 = vmatprep.subr.bf16.mxu0 %v909_v36 }
 0x1d0   :  { %912 = vmatpush1.bf16.msra.mxu0 %v911_v41 }
 0x1d1   :  { %914 = vmatprep.subr.bf16.mxu0 %v913_v44 }
 0x1d4   :  { %916 = vmatpush1.bf16.msra.mxu0 %v915_v49 }
 0x1d5   :  { %918 = vmatprep.subr.bf16.mxu0 %v917_v50 }
 0x1d8   :  { %920 = vmatpush1.bf16.msra.mxu0 %v919_v53 }
 0x1db   :  { %641 = vmatmul.mubr.f32.vlgmr.msra.gmra.mrb[0].mxu0 %v1112_v22 }
 0x2ae   :  { %v642_v54 = vpop.f32.mrb[0].mxu0 }
 0x2af   :  { %647 = vst [vmem:[#allocation8] sm:$0xff] %v642_v54  ;;  %v644_v55 = vpop.f32.mrb[1].mxu0 }
 0x2b0   :  { %648 = vst [vmem:[#allocation8 + $0x8] sm:$0xff] %v644_v55 }
 0x2b1   :  { %1014 = shalt.err (!%p1011_p0)
}
 0x2b2   :  { %s1015_s6 = scalar_lea.hbm %s1131_s4, 256 }
 0x2b3   :  { %p1016_p1 = scmp.ne.s32.totalorder %s1131_s4, %s1015_s6  ;;  %p1019_p2 = scmp.lt.u32.totalorder %s1015_s6, %s1131_s4 }
 0x2b5   :  { %p1021_p3 = pnand %p1019_p2, %p1016_p1 }
 0x2b7   :  { %1024 = shalt.err (!%p1021_p3)
}
 0x2b8   :  { %658 = dma.vmem_to_hbm [thread:$0]  %s656_s28, 256, %s1131_s4, [#allocation4]  }
 0x2b9   :  { %1029 = dma.done.wait [#allocation4], 256  }
 0x2ba   :  { %1030 = vsyncadd [#allocation4], 4294967040 }
 0x2bb   :  { %662 = vsyncpa [#allocation3], 1 }
 0x2bc   :  { %663 = vsyncpa [#allocation6], 1 }
 0x2bd   :  { %664 = vsyncpa [#allocation4], 1 }

</bundles_post_ra>
